<compile_context>
chip_gen: v7x
topology: tpu7x:2x2x1
jax: 0.10.0
libtpu: 0.0.40
codegen_flags: <defaults>
</compile_context>

<pallas_src>
import jax
import jax.numpy as jnp
from jax import lax
from jax.experimental import pallas as pl
from jax.experimental.pallas import tpu as pltpu


def _round_up(n, m):
    return ((n + m - 1) // m) * m


def _make_rnn_kernel(t_seq, b_pad, seq_len, seq_pad, num_chunks, mxu_dtype):
    needs_mask = seq_pad != seq_len

    def rnn_kernel(x_ref, w_ih_ref, w_hh_ref, bias_ref, w_fc_ref, b_fc_ref,
                   out_ref, h_scratch):
        s = pl.program_id(0)

        @pl.when(s == 0)
        def _():
            h_scratch[...] = jnp.zeros_like(h_scratch)

        # Hoisted input projection for the whole chunk: one big MXU matmul
        # with the combined bias (b_ih + b_hh) added once.  (T*Bp, Hp) f32.
        x_proj = (jnp.dot(x_ref[...], w_ih_ref[...],
                          preferred_element_type=jnp.float32)
                  + bias_ref[...])

        # Recurrence: h carried in registers; fully unrolled (t_seq <= 16).
        h = h_scratch[...]
        for t in range(t_seq):
            pre = x_proj[t * b_pad:(t + 1) * b_pad, :] + jnp.dot(
                h.astype(mxu_dtype), w_hh_ref[...],
                preferred_element_type=jnp.float32)
            h_new = jnp.tanh(pre)
            if needs_mask:
                # Freeze h on the zero-padded tail timesteps of the last chunk.
                h_new = jnp.where(s * t_seq + t < seq_len, h_new, h)
            h = h_new
        h_scratch[...] = h

        @pl.when(s == num_chunks - 1)
        def _():
            out = jnp.dot(h.astype(mxu_dtype), w_fc_ref[...],
                          preferred_element_type=jnp.float32) + b_fc_ref[...]
            out_ref[...] = out.astype(out_ref.dtype)

    return rnn_kernel


def rnn_forward(x, w_ih, w_hh, b_ih, b_hh, w_fc, b_fc, *,
                mxu_dtype=jnp.float32, t_seq=16):
    """x: (seq, batch, input); weights in PyTorch layout:
    W_ih: (hidden, input), W_hh: (hidden, hidden), W_fc: (output, hidden)."""
    seq_len, batch, input_size = x.shape
    hidden_size = w_ih.shape[0]
    output_size = w_fc.shape[0]

    # Lane/sublane-dense padded sizes.
    b_pad = _round_up(batch, 8)
    i_pad = _round_up(input_size, 128)
    h_pad = _round_up(hidden_size, 128)
    o_pad = _round_up(output_size, 128)

    t_chunk = max(1, min(t_seq, seq_len))
    seq_pad = _round_up(seq_len, t_chunk)
    num_chunks = seq_pad // t_chunk

    f32 = jnp.float32

    # Pad + cast operands.  Zero padding keeps padded hidden lanes exactly 0
    # through the recurrence (tanh(0) = 0, zero weight rows).
    x_p = (jnp.zeros((seq_pad, b_pad, i_pad), f32)
           .at[:seq_len, :batch, :input_size].set(x.astype(f32))
           .astype(mxu_dtype)
           .reshape(seq_pad * b_pad, i_pad))               # host-side flatten
    w_ih_p = (jnp.zeros((i_pad, h_pad), f32)
              .at[:input_size, :hidden_size].set(w_ih.T.astype(f32))
              .astype(mxu_dtype))
    w_hh_p = (jnp.zeros((h_pad, h_pad), f32)
              .at[:hidden_size, :hidden_size].set(w_hh.T.astype(f32))
              .astype(mxu_dtype))
    bias_p = (jnp.zeros((1, h_pad), f32)
              .at[:, :hidden_size].set((b_ih + b_hh).astype(f32)
                                       .reshape(1, hidden_size)))
    w_fc_p = (jnp.zeros((h_pad, o_pad), f32)
              .at[:hidden_size, :output_size].set(w_fc.T.astype(f32))
              .astype(mxu_dtype))
    b_fc_p = (jnp.zeros((1, o_pad), f32)
              .at[:, :output_size].set(b_fc.astype(f32).reshape(1, output_size)))

    kernel = _make_rnn_kernel(t_chunk, b_pad, seq_len, seq_pad, num_chunks,
                              mxu_dtype)

    grid_spec = pltpu.PrefetchScalarGridSpec(
        num_scalar_prefetch=0,
        grid=(num_chunks,),
        in_specs=[
            pl.BlockSpec((t_chunk * b_pad, i_pad), lambda s: (s, 0)),  # x chunk
            pl.BlockSpec((i_pad, h_pad), lambda s: (0, 0)),            # W_ih^T
            pl.BlockSpec((h_pad, h_pad), lambda s: (0, 0)),            # W_hh^T
            pl.BlockSpec((1, h_pad), lambda s: (0, 0)),                # bias
            pl.BlockSpec((h_pad, o_pad), lambda s: (0, 0)),            # W_fc^T
            pl.BlockSpec((1, o_pad), lambda s: (0, 0)),                # b_fc
        ],
        out_specs=pl.BlockSpec((b_pad, o_pad), lambda s: (0, 0)),
        scratch_shapes=[pltpu.VMEM((b_pad, h_pad), jnp.float32)],
    )

    out_p = pl.pallas_call(
        kernel,
        out_shape=jax.ShapeDtypeStruct((b_pad, o_pad), jnp.float32),
        grid_spec=grid_spec,
        compiler_params=pltpu.CompilerParams(
            dimension_semantics=("arbitrary",),          # recurrence: serial
            vmem_limit_bytes=32 * 1024 * 1024,           # safe on v5e/v6e/v7x
        ),
    )(x_p, w_ih_p, w_hh_p, bias_p, w_fc_p, b_fc_p)

    return out_p[:batch, :output_size]


def rnn_reference(x, w_ih, w_hh, b_ih, b_hh, w_fc, b_fc):
    """Pure-JAX f32 reference mirroring the PyTorch forward."""
    batch = x.shape[1]
    hidden = w_ih.shape[0]
    h0 = jnp.zeros((batch, hidden), jnp.float32)

    def step(h, x_t):
        h = jnp.tanh(x_t @ w_ih.T + b_ih + h @ w_hh.T + b_hh)
        return h, None

    h_last, _ = lax.scan(step, h0, x)
    return h_last @ w_fc.T + b_fc


if __name__ == "__main__":
    # Shapes from the PyTorch spec.
    seq_len, batch = 3, 1
    input_size, hidden_size, output_size = 10, 20, 5

    key = jax.random.PRNGKey(0)
    kx, k1, k2, k3, k4, k5, k6, kx2 = jax.random.split(key, 8)

    bound = 1.0 / jnp.sqrt(jnp.float32(hidden_size))
    w_ih = jax.random.uniform(k1, (hidden_size, input_size), jnp.float32, -bound, bound)
    w_hh = jax.random.uniform(k2, (hidden_size, hidden_size), jnp.float32, -bound, bound)
    b_ih = jax.random.uniform(k3, (hidden_size,), jnp.float32, -bound, bound)
    b_hh = jax.random.uniform(k4, (hidden_size,), jnp.float32, -bound, bound)
    w_fc = jax.random.uniform(k5, (output_size, hidden_size), jnp.float32, -bound, bound)
    b_fc = jax.random.uniform(k6, (output_size,), jnp.float32, -bound, bound)

    x = jax.random.normal(kx, (seq_len, batch, input_size), jnp.float32)

    # 1) Spec shapes, f32 MXU operands: bit-for-bit-close to the reference.
    out = jax.block_until_ready(
        rnn_forward(x, w_ih, w_hh, b_ih, b_hh, w_fc, b_fc))
    ref = rnn_reference(x, w_ih, w_hh, b_ih, b_hh, w_fc, b_fc)
    assert out.shape == (batch, output_size), out.shape
    assert jnp.allclose(out, ref, atol=1e-5, rtol=1e-5), (out, ref)

    # 2) Longer sequence: exercises multi-chunk seq streaming + tail masking.
    seq2, batch2 = 37, 2
    x2 = jax.random.normal(kx2, (seq2, batch2, input_size), jnp.float32)
    out2 = jax.block_until_ready(
        rnn_forward(x2, w_ih, w_hh, b_ih, b_hh, w_fc, b_fc))
    ref2 = rnn_reference(x2, w_ih, w_hh, b_ih, b_hh, w_fc, b_fc)
    assert jnp.allclose(out2, ref2, atol=1e-5, rtol=1e-5), (out2, ref2)

    # 3) bf16 MXU-operand fast path (v6e/v7x); accumulate/bias/tanh stay f32.
    out_bf16 = jax.block_until_ready(
        rnn_forward(x, w_ih, w_hh, b_ih, b_hh, w_fc, b_fc,
                    mxu_dtype=jnp.bfloat16))
    assert jnp.allclose(out_bf16, ref, atol=2e-2, rtol=2e-2), (out_bf16, ref)

    print("KERNEL_OK")
</pallas_src>

<mosaic_0001>
module attributes {stable_mosaic.version = 11 : i64} {
  func.func @rnn_kernel(%arg0: i32, %arg1: memref<24x128xf32, #tpu.memory_space<vmem>>, %arg2: memref<128x128xf32, #tpu.memory_space<vmem>>, %arg3: memref<128x128xf32, #tpu.memory_space<vmem>>, %arg4: memref<1x128xf32, #tpu.memory_space<vmem>>, %arg5: memref<128x128xf32, #tpu.memory_space<vmem>>, %arg6: memref<1x128xf32, #tpu.memory_space<vmem>>, %arg7: memref<8x128xf32, #tpu.memory_space<vmem>>, %arg8: memref<8x128xf32, #tpu.memory_space<vmem>>) attributes {dimension_semantics = [#tpu.dimension_semantics<arbitrary>], iteration_bounds = array<i64: 1>, scalar_prefetch = 0 : i64, scratch_operands = 1 : i64, tpu.core_type = #tpu.core_type<tc>, window_params = [{transform_indices = @transform_0, window_bounds = array<i64: 24, 128>}, {pipeline_mode = #tpu.pipeline_mode<synchronous>, transform_indices = @transform_1, window_bounds = array<i64: 128, 128>}, {pipeline_mode = #tpu.pipeline_mode<synchronous>, transform_indices = @transform_2, window_bounds = array<i64: 128, 128>}, {pipeline_mode = #tpu.pipeline_mode<synchronous>, transform_indices = @transform_3, window_bounds = array<i64: 1, 128>}, {pipeline_mode = #tpu.pipeline_mode<synchronous>, transform_indices = @transform_4, window_bounds = array<i64: 128, 128>}, {pipeline_mode = #tpu.pipeline_mode<synchronous>, transform_indices = @transform_5, window_bounds = array<i64: 1, 128>}, {pipeline_mode = #tpu.pipeline_mode<synchronous>, transform_indices = @transform_6, window_bounds = array<i64: 8, 128>}]} {
    %c0_i32 = arith.constant 0 : i32
    %0 = arith.cmpi eq, %arg0, %c0_i32 : i32
    %1 = arith.extui %0 : i1 to i32
    %c0_i32_0 = arith.constant 0 : i32
    %2 = arith.cmpi ne, %1, %c0_i32_0 : i32
    scf.if %2 {
      %cst_21 = arith.constant 0.000000e+00 : f32
      %29 = vector.broadcast %cst_21 : f32 to vector<8x128xf32>
      %c0_22 = arith.constant 0 : index
      %c0_23 = arith.constant 0 : index
      %30 = vector.load %arg8[%c0_22, %c0_23] : memref<8x128xf32, #tpu.memory_space<vmem>>, vector<8x128xf32>
      tpu.vector_store %arg8[%c0_22, %c0_23], %29 {strides = array<i32>} : memref<8x128xf32, #tpu.memory_space<vmem>>, vector<8x128xf32>,
    } else {
    }
    %c0 = arith.constant 0 : index
    %c0_1 = arith.constant 0 : index
    %3 = vector.load %arg1[%c0, %c0_1] : memref<24x128xf32, #tpu.memory_space<vmem>>, vector<24x128xf32>
    %c0_2 = arith.constant 0 : index
    %c0_3 = arith.constant 0 : index
    %4 = vector.load %arg2[%c0_2, %c0_3] : memref<128x128xf32, #tpu.memory_space<vmem>>, vector<128x128xf32>
    %cst = arith.constant dense<0.000000e+00> : vector<24x128xf32>
    %5 = tpu.matmul %3, %4, %cst {dimension_numbers = #tpu.dot_dimension_numbers<[1], [0], [0], [1], [0, 0, 1, 1], [], []>} : vector<24x128xf32>, vector<128x128xf32>, vector<24x128xf32> -> vector<24x128xf32>
    %c0_4 = arith.constant 0 : index
    %c0_5 = arith.constant 0 : index
    %6 = vector.load %arg4[%c0_4, %c0_5] : memref<1x128xf32, #tpu.memory_space<vmem>>, vector<1x128xf32>
    %7 = vector.broadcast %6 : vector<1x128xf32> to vector<24x128xf32>
    %8 = arith.addf %5, %7 : vector<24x128xf32>
    %c0_6 = arith.constant 0 : index
    %c0_7 = arith.constant 0 : index
    %9 = vector.load %arg8[%c0_6, %c0_7] : memref<8x128xf32, #tpu.memory_space<vmem>>, vector<8x128xf32>
    %10 = vector.extract_strided_slice %8 {offsets = [0, 0], sizes = [8, 128], strides = [1, 1]} : vector<24x128xf32> to vector<8x128xf32>
    %c0_8 = arith.constant 0 : index
    %c0_9 = arith.constant 0 : index
    %11 = vector.load %arg3[%c0_8, %c0_9] : memref<128x128xf32, #tpu.memory_space<vmem>>, vector<128x128xf32>
    %cst_10 = arith.constant dense<0.000000e+00> : vector<8x128xf32>
    %12 = tpu.matmul %9, %11, %cst_10 {dimension_numbers = #tpu.dot_dimension_numbers<[1], [0], [0], [1], [0, 0, 1, 1], [], []>} : vector<8x128xf32>, vector<128x128xf32>, vector<8x128xf32> -> vector<8x128xf32>
    %13 = arith.addf %10, %12 : vector<8x128xf32>
    %14 = math.tanh %13 : vector<8x128xf32>
    %15 = vector.extract_strided_slice %8 {offsets = [8, 0], sizes = [8, 128], strides = [1, 1]} : vector<24x128xf32> to vector<8x128xf32>
    %c0_11 = arith.constant 0 : index
    %c0_12 = arith.constant 0 : index
    %16 = vector.load %arg3[%c0_11, %c0_12] : memref<128x128xf32, #tpu.memory_space<vmem>>, vector<128x128xf32>
    %cst_13 = arith.constant dense<0.000000e+00> : vector<8x128xf32>
    %17 = tpu.matmul %14, %16, %cst_13 {dimension_numbers = #tpu.dot_dimension_numbers<[1], [0], [0], [1], [0, 0, 1, 1], [], []>} : vector<8x128xf32>, vector<128x128xf32>, vector<8x128xf32> -> vector<8x128xf32>
    %18 = arith.addf %15, %17 : vector<8x128xf32>
    %19 = math.tanh %18 : vector<8x128xf32>
    %20 = vector.extract_strided_slice %8 {offsets = [16, 0], sizes = [8, 128], strides = [1, 1]} : vector<24x128xf32> to vector<8x128xf32>
    %c0_14 = arith.constant 0 : index
    %c0_15 = arith.constant 0 : index
    %21 = vector.load %arg3[%c0_14, %c0_15] : memref<128x128xf32, #tpu.memory_space<vmem>>, vector<128x128xf32>
    %cst_16 = arith.constant dense<0.000000e+00> : vector<8x128xf32>
    %22 = tpu.matmul %19, %21, %cst_16 {dimension_numbers = #tpu.dot_dimension_numbers<[1], [0], [0], [1], [0, 0, 1, 1], [], []>} : vector<8x128xf32>, vector<128x128xf32>, vector<8x128xf32> -> vector<8x128xf32>
    %23 = arith.addf %20, %22 : vector<8x128xf32>
    %24 = math.tanh %23 : vector<8x128xf32>
    %c0_17 = arith.constant 0 : index
    %c0_18 = arith.constant 0 : index
    %25 = vector.load %arg8[%c0_17, %c0_18] : memref<8x128xf32, #tpu.memory_space<vmem>>, vector<8x128xf32>
    tpu.vector_store %arg8[%c0_17, %c0_18], %24 {strides = array<i32>} : memref<8x128xf32, #tpu.memory_space<vmem>>, vector<8x128xf32>,
    %c0_i32_19 = arith.constant 0 : i32
    %26 = arith.cmpi eq, %arg0, %c0_i32_19 : i32
    %27 = arith.extui %26 : i1 to i32
    %c0_i32_20 = arith.constant 0 : i32
    %28 = arith.cmpi ne, %27, %c0_i32_20 : i32
    scf.if %28 {
      %c0_21 = arith.constant 0 : index
      %c0_22 = arith.constant 0 : index
      %29 = vector.load %arg5[%c0_21, %c0_22] : memref<128x128xf32, #tpu.memory_space<vmem>>, vector<128x128xf32>
      %cst_23 = arith.constant dense<0.000000e+00> : vector<8x128xf32>
      %30 = tpu.matmul %24, %29, %cst_23 {dimension_numbers = #tpu.dot_dimension_numbers<[1], [0], [0], [1], [0, 0, 1, 1], [], []>} : vector<8x128xf32>, vector<128x128xf32>, vector<8x128xf32> -> vector<8x128xf32>
      %c0_24 = arith.constant 0 : index
      %c0_25 = arith.constant 0 : index
      %31 = vector.load %arg6[%c0_24, %c0_25] : memref<1x128xf32, #tpu.memory_space<vmem>>, vector<1x128xf32>
      %32 = vector.broadcast %31 : vector<1x128xf32> to vector<8x128xf32>
      %33 = arith.addf %30, %32 : vector<8x128xf32>
      %c0_26 = arith.constant 0 : index
      %c0_27 = arith.constant 0 : index
      %34 = vector.load %arg7[%c0_26, %c0_27] : memref<8x128xf32, #tpu.memory_space<vmem>>, vector<8x128xf32>
      tpu.vector_store %arg7[%c0_26, %c0_27], %33 {strides = array<i32>} : memref<8x128xf32, #tpu.memory_space<vmem>>, vector<8x128xf32>,
    } else {
    }
    return
  }
  func.func @transform_0(%arg0: i32) -> (i32, i32) {
    %c0_i32 = arith.constant 0 : i32
    %c0_i32_0 = arith.constant 0 : i32
    return %arg0, %c0_i32 : i32, i32
  }
  func.func @transform_1(%arg0: i32) -> (i32, i32) {
    %c0_i32 = arith.constant 0 : i32
    %c0_i32_0 = arith.constant 0 : i32
    %c0_i32_1 = arith.constant 0 : i32
    return %c0_i32, %c0_i32_0 : i32, i32
  }
  func.func @transform_2(%arg0: i32) -> (i32, i32) {
    %c0_i32 = arith.constant 0 : i32
    %c0_i32_0 = arith.constant 0 : i32
    %c0_i32_1 = arith.constant 0 : i32
    return %c0_i32, %c0_i32_0 : i32, i32
  }
  func.func @transform_3(%arg0: i32) -> (i32, i32) {
    %c0_i32 = arith.constant 0 : i32
    %c0_i32_0 = arith.constant 0 : i32
    %c0_i32_1 = arith.constant 0 : i32
    return %c0_i32, %c0_i32_0 : i32, i32
  }
  func.func @transform_4(%arg0: i32) -> (i32, i32) {
    %c0_i32 = arith.constant 0 : i32
    %c0_i32_0 = arith.constant 0 : i32
    %c0_i32_1 = arith.constant 0 : i32
    return %c0_i32, %c0_i32_0 : i32, i32
  }
  func.func @transform_5(%arg0: i32) -> (i32, i32) {
    %c0_i32 = arith.constant 0 : i32
    %c0_i32_0 = arith.constant 0 : i32
    %c0_i32_1 = arith.constant 0 : i32
    return %c0_i32, %c0_i32_0 : i32, i32
  }
  func.func @transform_6(%arg0: i32) -> (i32, i32) {
    %c0_i32 = arith.constant 0 : i32
    %c0_i32_0 = arith.constant 0 : i32
    %c0_i32_1 = arith.constant 0 : i32
    return %c0_i32, %c0_i32_0 : i32, i32
  }
}

</mosaic_0001>

<bundles_post_ra>
// kernel: tpu_custom_call.1
= control target key start
LH: loop header
LB: loop body
LE: loop exit
PB: predicated region body
PF: predicated region fallthrough
CT: control target
= control target key end

     0   :  { %11 = vsyncpa [#allocation4], 0  ;;  %s1295_s0 = inlined_call_operand.hbm [shape: f32[24,128], index: 0, kind: input, shape index: {}]   ;;  %s1296_s1 = inlined_call_operand.hbm [shape: f32[128,128], index: 1, kind: input, shape index: {}]   ;;  %s1297_s2 = inlined_call_operand.hbm [shape: f32[128,128], index: 2, kind: input, shape index: {}]   ;;  %s1298_s3 = inlined_call_operand.vmem [shape: f32[1,128], index: 3, kind: input, shape index: {}]   ;;  %s1299_s4 = inlined_call_operand.hbm [shape: f32[128,128], index: 4, kind: input, shape index: {}]   ;;  %s1300_s5 = inlined_call_operand.vmem [shape: f32[1,128], index: 5, kind: input, shape index: {}]   ;;  %s1301_s6 = inlined_call_operand.hbm [shape: f32[8,128], index: 6, kind: output, shape index: {}]  }
   0x1   :  { %12 = vsyncpa [#allocation7], 0 }
   0x2   :  { %13 = vsyncpa [#allocation10], 0 }
   0x3   :  { %14 = vsyncpa [#allocation5], 0  ;;  %s1068_s21 = smov [#allocation6]   ;;  %s1069_s23 = smov [#allocation3]  }
   0x4   :  { %s32_s22 = sshll.u32 %s1068_s21, 4  ;;  %s20_s24 = sshll.u32 %s1069_s23, 4  ;;  %s33_s22 = int_to_ptr.vmem [resolvable:$true] %s32_s22  ;;  %s1113_s24 = int_to_ptr.vmem [resolvable:$true] %s20_s24 }
   0x5   :  { %s950_s27 = scalar_lea.hbm %s1296_s1, 2048 }
   0x6   :  { %p951_p0 = scmp.ne.s32.totalorder %s1296_s1, %s950_s27  ;;  %p954_p1 = scmp.lt.u32.totalorder %s950_s27, %s1296_s1 }
   0x8   :  { %p956_p2 = pnand %p954_p1, %p951_p0 }
   0xa   :  { %959 = shalt.err (!%p956_p2)
}
   0xb   :  { %s960_s8 = scalar_lea.vmem %s33_s22, 2048  ;;  %p965_p4 = scmp.lt.s32.totalorder %s33_s22, %s33_s22 }
   0xc   :  { %p961_p3 = scmp.ne.s32.totalorder %s33_s22, %s960_s8  ;;  %p966_p5 = scmp.lt.s32.totalorder %s960_s8, %s960_s8 }
   0xe   :  { %p967_p6 = por %p966_p5, %p965_p4 }
  0x10   :  { %p968_p7 = pnand %p967_p6, %p961_p3 }
  0x12   :  { %971 = shalt.err (!%p968_p7)
}
  0x13   :  { %s1070_s9 = smov 128   ;;  %s1071_s10 = smov 8  }
  0x14   :  { %38 = dma.hbm_to_vmem [thread:$0]  %s1296_s1, 2048, %s33_s22, [#allocation7], %s1070_s9, %s1070_s9, %s1071_s10  }
  0x15   :  { %s972_s15 = scalar_lea.hbm %s1295_s0, 384 }
  0x16   :  { %p973_p8 = scmp.ne.s32.totalorder %s1295_s0, %s972_s15  ;;  %p976_p9 = scmp.lt.u32.totalorder %s972_s15, %s1295_s0 }
  0x18   :  { %p978_p10 = pnand %p976_p9, %p973_p8 }
  0x1a   :  { %981 = shalt.err (!%p978_p10)
}
  0x1b   :  { %s982_s20 = scalar_lea.vmem %s1113_s24, 384  ;;  %p987_p12 = scmp.lt.s32.totalorder %s1113_s24, %s1113_s24 }
  0x1c   :  { %p983_p11 = scmp.ne.s32.totalorder %s1113_s24, %s982_s20  ;;  %p988_p13 = scmp.lt.s32.totalorder %s982_s20, %s982_s20 }
  0x1e   :  { %p989_p0 = por %p988_p13, %p987_p12 }
  0x20   :  { %p990_p1 = pnand %p989_p0, %p983_p11 }
  0x22   :  { %993 = shalt.err (!%p990_p1)
}
  0x23   :  { %26 = dma.hbm_to_vmem [thread:$0]  %s1295_s0, 384, %s1113_s24, [#allocation4], %s1070_s9, %s1070_s9, %s1071_s10  }
  0x24   :  { %s1072_s22 = smov [#allocation8]   ;;  %s1073_s25 = smov [#allocation9]  }
  0x25   :  { %s44_s23 = sshll.u32 %s1072_s22, 4  ;;  %s58_s26 = sshll.u32 %s1073_s25, 4  ;;  %s45_s23 = int_to_ptr.vmem [resolvable:$true] %s44_s23  ;;  %s1150_s26 = int_to_ptr.vmem [resolvable:$true] %s58_s26 }
  0x26   :  { %s994_s29 = scalar_lea.hbm %s1297_s2, 2048 }
  0x27   :  { %p995_p2 = scmp.ne.s32.totalorder %s1297_s2, %s994_s29  ;;  %p998_p3 = scmp.lt.u32.totalorder %s994_s29, %s1297_s2 }
  0x29   :  { %p1000_p4 = pnand %p998_p3, %p995_p2 }
  0x2b   :  { %1003 = shalt.err (!%p1000_p4)
}
  0x2c   :  { %s1004_s0 = scalar_lea.vmem %s45_s23, 2048  ;;  %p1009_p6 = scmp.lt.s32.totalorder %s45_s23, %s45_s23 }
  0x2d   :  { %p1005_p5 = scmp.ne.s32.totalorder %s45_s23, %s1004_s0  ;;  %p1010_p7 = scmp.lt.s32.totalorder %s1004_s0, %s1004_s0 }
  0x2f   :  { %p1011_p8 = por %p1010_p7, %p1009_p6 }
  0x31   :  { %p1012_p9 = pnand %p1011_p8, %p1005_p5 }
  0x33   :  { %1015 = shalt.err (!%p1012_p9)
}
  0x34   :  { %50 = dma.hbm_to_vmem [thread:$0]  %s1297_s2, 2048, %s45_s23, [#allocation7], %s1070_s9, %s1070_s9, %s1071_s10  }
  0x35   :  { %s1016_s15 = scalar_lea.hbm %s1299_s4, 2048 }
  0x36   :  { %p1017_p10 = scmp.ne.s32.totalorder %s1299_s4, %s1016_s15  ;;  %p1020_p11 = scmp.lt.u32.totalorder %s1016_s15, %s1299_s4 }
  0x38   :  { %p1022_p12 = pnand %p1020_p11, %p1017_p10 }
  0x3a   :  { %1025 = shalt.err (!%p1022_p12)
}
  0x3b   :  { %s1026_s20 = scalar_lea.vmem %s1150_s26, 2048  ;;  %p1031_p0 = scmp.lt.s32.totalorder %s1150_s26, %s1150_s26 }
  0x3c   :  { %p1027_p13 = scmp.ne.s32.totalorder %s1150_s26, %s1026_s20  ;;  %p1032_p1 = scmp.lt.s32.totalorder %s1026_s20, %s1026_s20 }
  0x3e   :  { %p1033_p2 = por %p1032_p1, %p1031_p0 }
  0x40   :  { %p1034_p3 = pnand %p1033_p2, %p1027_p13 }
  0x42   :  { %1037 = shalt.err (!%p1034_p3)
}
  0x43   :  { %64 = dma.hbm_to_vmem [thread:$0]  %s1299_s4, 2048, %s1150_s26, [#allocation10], %s1070_s9, %s1070_s9, %s1071_s10  }
  0x44   :  { %1060 = dma.done.wait [#allocation4], 384  }
  0x45   :  { %1061 = vsyncadd [#allocation4], 4294966912 }
  0x46   :  { %1062 = dma.done.wait [#allocation7], 4096  }
  0x47   :  { %1063 = vsyncadd [#allocation7], 4294963200 }
  0x48   :  { %1064 = dma.done.wait [#allocation10], 2048  }
  0x49   :  { %1065 = vsyncadd [#allocation10], 4294965248  ;;  %v1074_v0 = vmov 0.0|0.0   ;;  %vm1075_vm0 = vmmov 0   ;;  %v1076_v1 = vmov 0.0   ;;  %v87_v2 = vld [vmem:[#allocation6] sm:$0xff] }
  0x4a   :  { %808 = vmatprep.subr.bf16.mxu1 %v1074_v0  ;;  %832 = vmatprep.subr.bf16.mxu0 %v1074_v0  ;;  %v88_v3 = vld [vmem:[#allocation6 + $0x8] sm:$0xff]  ;;  %v191_v4 = vld [vmem:[#allocation8] sm:$0xff]  ;;  %v89_v7 = vld [vmem:[#allocation6 + $0x10] sm:$0xff]  ;;  %s1077_s21 = smov [#allocation11]  }
  0x4b   :  { %659 = vmatprep.mubr.msk.f32.mxu1 %vm1075_vm0, %v1076_v1  ;;  %700 = vmatprep.mubr.msk.f32.mxu0 %vm1075_vm0, %v1076_v1  ;;  %v809_v5 = vpack.c.bf16 %v88_v3, %v87_v2  ;;  %v192_v6 = vld [vmem:[#allocation8 + $0x8] sm:$0xff]  ;;  %v90_v8 = vld [vmem:[#allocation6 + $0x18] sm:$0xff]  ;;  %v193_v10 = vld [vmem:[#allocation8 + $0x10] sm:$0xff]  ;;  %s527_s22 = sshll.u32 %s1077_s21, 4  ;;  %s528_s22 = int_to_ptr.vmem [resolvable:$true] %s527_s22 }
  0x4c   :  { %v1193_v9 = vpack.c.bf16 %v192_v6, %v191_v4  ;;  %v194_v11 = vld [vmem:[#allocation8 + $0x18] sm:$0xff]  ;;  %v812_v12 = vpack.c.bf16 %v90_v8, %v89_v7  ;;  %v91_v14 = vld [vmem:[#allocation6 + $0x20] sm:$0xff]  ;;  %v92_v15 = vld [vmem:[#allocation6 + $0x28] sm:$0xff]  ;;  %s1038_s23 = scalar_lea.vmem %s528_s22, 128  ;;  %p1043_p5 = scmp.lt.s32.totalorder %s528_s22, %s528_s22 }
  0x4d   :  { %810 = vmatpush3.bf16.msra.mxu1 %v809_v5  ;;  %v1197_v13 = vpack.c.bf16 %v194_v11, %v193_v10  ;;  %v195_v16 = vld [vmem:[#allocation8 + $0x20] sm:$0xff]  ;;  %v196_v17 = vld [vmem:[#allocation8 + $0x28] sm:$0xff]  ;;  %v815_v18 = vpack.c.bf16 %v92_v15, %v91_v14  ;;  %v93_v20 = vld [vmem:[#allocation6 + $0x30] sm:$0xff]  ;;  %p1039_p4 = scmp.ne.s32.totalorder %s528_s22, %s1038_s23  ;;  %p1044_p6 = scmp.lt.s32.totalorder %s1038_s23, %s1038_s23 }
  0x4e   :  { %834 = vmatpush3.bf16.msra.mxu0 %v1193_v9  ;;  %811 = vmatprep.subr.bf16.mxu1 %v1074_v0  ;;  %v1202_v19 = vpack.c.bf16 %v196_v17, %v195_v16  ;;  %v94_v21 = vld [vmem:[#allocation6 + $0x38] sm:$0xff]  ;;  %v197_v22 = vld [vmem:[#allocation8 + $0x30] sm:$0xff]  ;;  %v95_v26 = vld [vmem:[#allocation6 + $0x40] sm:$0xff] }
  0x4f   :  { %835 = vmatprep.subr.bf16.mxu0 %v1074_v0  ;;  %v198_v23 = vld [vmem:[#allocation8 + $0x38] sm:$0xff]  ;;  %v818_v24 = vpack.c.bf16 %v94_v21, %v93_v20  ;;  %v96_v27 = vld [vmem:[#allocation6 + $0x48] sm:$0xff]  ;;  %v199_v28 = vld [vmem:[#allocation8 + $0x40] sm:$0xff]  ;;  %p1045_p7 = por %p1044_p6, %p1043_p5 }
  0x50   :  { %v1207_v25 = vpack.c.bf16 %v198_v23, %v197_v22  ;;  %v200_v29 = vld [vmem:[#allocation8 + $0x48] sm:$0xff]  ;;  %v821_v30 = vpack.c.bf16 %v96_v27, %v95_v26  ;;  %v97_v32 = vld [vmem:[#allocation6 + $0x50] sm:$0xff]  ;;  %v98_v33 = vld [vmem:[#allocation6 + $0x58] sm:$0xff] }
  0x51   :  { %813 = vmatpush3.bf16.msra.mxu1 %v812_v12  ;;  %v1212_v31 = vpack.c.bf16 %v200_v29, %v199_v28  ;;  %v201_v34 = vld [vmem:[#allocation8 + $0x50] sm:$0xff]  ;;  %v202_v35 = vld [vmem:[#allocation8 + $0x58] sm:$0xff]  ;;  %v824_v36 = vpack.c.bf16 %v98_v33, %v97_v32  ;;  %v99_v38 = vld [vmem:[#allocation6 + $0x60] sm:$0xff]  ;;  %p1046_p8 = pnand %p1045_p7, %p1039_p4 }
  0x52   :  { %837 = vmatpush3.bf16.msra.mxu0 %v1197_v13  ;;  %814 = vmatprep.subr.bf16.mxu1 %v1074_v0  ;;  %v1217_v37 = vpack.c.bf16 %v202_v35, %v201_v34  ;;  %v100_v39 = vld [vmem:[#allocation6 + $0x68] sm:$0xff]  ;;  %v203_v40 = vld [vmem:[#allocation8 + $0x60] sm:$0xff]  ;;  %v101_v44 = vld [vmem:[#allocation6 + $0x70] sm:$0xff] }
  0x53   :  { %838 = vmatprep.subr.bf16.mxu0 %v1074_v0  ;;  %v204_v41 = vld [vmem:[#allocation8 + $0x68] sm:$0xff]  ;;  %v827_v42 = vpack.c.bf16 %v100_v39, %v99_v38  ;;  %v102_v45 = vld [vmem:[#allocation6 + $0x78] sm:$0xff]  ;;  %v205_v46 = vld [vmem:[#allocation8 + $0x70] sm:$0xff] }
  0x54   :  { %v851_v43 = vpack.c.bf16 %v204_v41, %v203_v40  ;;  %v206_v47 = vld [vmem:[#allocation8 + $0x78] sm:$0xff]  ;;  %v830_v48 = vpack.c.bf16 %v102_v45, %v101_v44  ;;  %v84_v50 = vld [vmem:[#allocation3] sm:$0xff]  ;;  %v85_v51 = vld [vmem:[#allocation3 + $0x8] sm:$0xff] }
  0x55   :  { %816 = vmatpush3.bf16.msra.mxu1 %v815_v18  ;;  %v854_v49 = vpack.c.bf16 %v206_v47, %v205_v46  ;;  %v1251_v52 = vld [vmem:[%s1298_s3] ss:$0 sm:$0xff]  ;;  %v86_v62 = vld [vmem:[#allocation3 + $0x10] sm:$0xff]  ;;  %v427_v63 = vld [vmem:[#allocation9] sm:$0xff] }
  0x56   :  { %840 = vmatpush3.bf16.msra.mxu0 %v1202_v19  ;;  %817 = vmatprep.subr.bf16.mxu1 %v1074_v0  ;;  %v428_v2 = vld [vmem:[#allocation9 + $0x8] sm:$0xff]  ;;  %v429_v3 = vld [vmem:[#allocation9 + $0x10] sm:$0xff]  ;;  %v430_v5 = vld [vmem:[#allocation9 + $0x18] sm:$0xff] }
  0x57   :  { %841 = vmatprep.subr.bf16.mxu0 %v1074_v0  ;;  %v905_v4 = vpack.c.bf16 %v428_v2, %v427_v63  ;;  %v908_v6 = vpack.c.bf16 %v430_v5, %v429_v3  ;;  %v431_v7 = vld [vmem:[#allocation9 + $0x20] sm:$0xff]  ;;  %v432_v8 = vld [vmem:[#allocation9 + $0x28] sm:$0xff]  ;;  %v433_v10 = vld [vmem:[#allocation9 + $0x30] sm:$0xff] }
  0x58   :  { %v434_v11 = vld [vmem:[#allocation9 + $0x38] sm:$0xff]  ;;  %v437_v22 = vld [vmem:[#allocation9 + $0x50] sm:$0xff]  ;;  %v440_v26 = vld [vmem:[#allocation9 + $0x68] sm:$0xff] }
  0x59   :  { %819 = vmatpush3.bf16.msra.mxu1 %v818_v24  ;;  %v914_v12 = vpack.c.bf16 %v434_v11, %v433_v10  ;;  %v438_v23 = vld [vmem:[#allocation9 + $0x58] sm:$0xff]  ;;  %v441_v28 = vld [vmem:[#allocation9 + $0x70] sm:$0xff] }
  0x5a   :  { %843 = vmatpush3.bf16.msra.mxu0 %v1207_v25  ;;  %820 = vmatprep.subr.bf16.mxu1 %v1074_v0  ;;  %v920_v24 = vpack.c.bf16 %v438_v23, %v437_v22  ;;  %v442_v29 = vld [vmem:[#allocation9 + $0x78] sm:$0xff] }
  0x5b   :  { %844 = vmatprep.subr.bf16.mxu0 %v1074_v0 }
  0x5d   :  { %822 = vmatpush3.bf16.msra.mxu1 %v821_v30  ;;  %v926_v30 = vpack.c.bf16 %v442_v29, %v441_v28 }
  0x5e   :  { %846 = vmatpush3.bf16.msra.mxu0 %v1212_v31  ;;  %823 = vmatprep.subr.bf16.mxu1 %v1074_v0 }
  0x5f   :  { %847 = vmatprep.subr.bf16.mxu0 %v1074_v0 }
  0x61   :  { %825 = vmatpush3.bf16.msra.mxu1 %v824_v36  ;;  %v539_v36 = vld [vmem:[%s1300_s5] ss:$0 sm:$0xff] }
  0x62   :  { %849 = vmatpush3.bf16.msra.mxu0 %v1217_v37  ;;  %826 = vmatprep.subr.bf16.mxu1 %v1074_v0 }
  0x63   :  { %850 = vmatprep.subr.bf16.mxu0 %v1074_v0 }
  0x65   :  { %828 = vmatpush3.bf16.msra.mxu1 %v827_v42 }
  0x66   :  { %852 = vmatpush3.bf16.msra.mxu0 %v851_v43  ;;  %829 = vmatprep.subr.bf16.mxu1 %v1074_v0 }
  0x67   :  { %853 = vmatprep.subr.bf16.mxu0 %v1074_v0 }
  0x69   :  { %831 = vmatpush3.bf16.msra.mxu1 %v830_v48 }
  0x6a   :  { %855 = vmatpush3.bf16.msra.mxu0 %v854_v49  ;;  %904 = vmatprep.subr.bf16.mxu1 %v1074_v0 }
  0x6b   :  { %856 = vmatprep.subr.bf16.mxu0 %v1074_v0 }
  0x6c   :  { %660 = vmatmul.mubr.f32.vlgmr.msra.gmra.mrb[0].mxu1 %v84_v50 }
  0x6d   :  { %701 = vmatmul.mubr.f32.vlgmr.msra.gmra.mrb[0].mxu0 %v1076_v1  ;;  %662 = vmatprep.mubr.msk.f32.mxu1 %vm1075_vm0, %v1076_v1 }
  0x6e   :  { %858 = vmatpush3.bf16.msra.mxu0 %v1193_v9  ;;  %735 = vmatprep.mubr.msk.f32.mxu0 %vm1075_vm0, %v1076_v1 }
  0x6f   :  { %859 = vmatprep.subr.bf16.mxu0 %v1074_v0  ;;  %906 = vmatpush3.bf16.msra.mxu1 %v905_v4 }
  0x70   :  { %663 = vmatmul.mubr.f32.gmra.mrb[2].mxu1 %v85_v51  ;;  %907 = vmatprep.subr.bf16.mxu1 %v1074_v0 }
  0x71   :  { %665 = vmatprep.mubr.msk.f32.mxu1 %vm1075_vm0, %v1076_v1 }
  0x72   :  { %861 = vmatpush3.bf16.msra.mxu0 %v1197_v13 }
  0x73   :  { %862 = vmatprep.subr.bf16.mxu0 %v1074_v0  ;;  %909 = vmatpush3.bf16.msra.mxu1 %v908_v6 }
  0x74   :  { %666 = vmatmul.mubr.f32.gmra.mrb[4].mxu1 %v86_v62  ;;  %910 = vmatprep.subr.bf16.mxu1 %v1074_v0 }
  0x75   :  { %805 = vmatprep.mubr.msk.f32.mxu1 %vm1075_vm0, %v1076_v1 }
  0x76   :  { %864 = vmatpush3.bf16.msra.mxu0 %v1202_v19 }
  0x77   :  { %865 = vmatprep.subr.bf16.mxu0 %v1074_v0 }
  0x7a   :  { %867 = vmatpush3.bf16.msra.mxu0 %v1207_v25 }
  0x7b   :  { %868 = vmatprep.subr.bf16.mxu0 %v1074_v0 }
  0x7e   :  { %870 = vmatpush3.bf16.msra.mxu0 %v1212_v31 }
  0x7f   :  { %871 = vmatprep.subr.bf16.mxu0 %v1074_v0 }
  0x82   :  { %873 = vmatpush3.bf16.msra.mxu0 %v1217_v37 }
  0x83   :  { %874 = vmatprep.subr.bf16.mxu0 %v1074_v0 }
  0x86   :  { %876 = vmatpush3.bf16.msra.mxu0 %v851_v43 }
  0x87   :  { %877 = vmatprep.subr.bf16.mxu0 %v1074_v0 }
  0x8a   :  { %879 = vmatpush3.bf16.msra.mxu0 %v854_v49 }
  0x8b   :  { %880 = vmatprep.subr.bf16.mxu0 %v1074_v0 }
 0x13f   :  { %v176_v53 = vpop.f32.mrb[0].mxu1 }
 0x140   :  { %v177_v54 = vadd.f32 %v1251_v52, %v176_v53  ;;  %v661_v55 = vpop.f32.mrb[1].mxu1  ;;  %v273_v56 = vpop.f32.mrb[0].mxu0 }
 0x141   :  { %v702_v57 = vpop.f32.mrb[1].mxu0 }
 0x142   :  { %v277_v58 = vadd.f32 %v273_v56, %v177_v54 }
 0x143   :  { %v181_v60 = vpop.f32.mrb[2].mxu1 }
 0x144   :  { %944 = vtanh.f32 %v277_v58  ;;  %v664_v61 = vpop.f32.mrb[3].mxu1  ;;  %v182_v15 = vadd.f32 %v1251_v52, %v181_v60 }
 0x147   :  { %v186_v20 = vpop.f32.mrb[4].mxu1 }
 0x148   :  { %v667_v21 = vpop.f32.mrb[5].mxu1 }
 0x14e   :  { %v945_v59 = vpop.eup %944 }
 0x14f   :  { %736 = vmatmul.mubr.f32.vlgmr.msra.gmra.mrb[2].mxu0 %v945_v59 }
 0x150   :  { %882 = vmatpush3.bf16.msra.mxu0 %v1193_v9  ;;  %770 = vmatprep.mubr.msk.f32.mxu0 %vm1075_vm0, %v1076_v1  ;;  %v911_v9 = vpack.c.bf16 %v432_v8, %v431_v7  ;;  %v435_v1 = vld [vmem:[#allocation9 + $0x40] sm:$0xff] }
 0x151   :  { %883 = vmatprep.subr.bf16.mxu0 %v1074_v0 }
 0x152   :  { %912 = vmatpush3.bf16.msra.mxu1 %v911_v9 }
 0x153   :  { %913 = vmatprep.subr.bf16.mxu1 %v1074_v0 }
 0x154   :  { %885 = vmatpush3.bf16.msra.mxu0 %v1197_v13  ;;  %v436_v13 = vld [vmem:[#allocation9 + $0x48] sm:$0xff] }
 0x155   :  { %886 = vmatprep.subr.bf16.mxu0 %v1074_v0  ;;  %v917_v14 = vpack.c.bf16 %v436_v13, %v435_v1 }
 0x156   :  { %915 = vmatpush3.bf16.msra.mxu1 %v914_v12 }
 0x157   :  { %916 = vmatprep.subr.bf16.mxu1 %v1074_v0 }
 0x158   :  { %888 = vmatpush3.bf16.msra.mxu0 %v1202_v19 }
 0x159   :  { %889 = vmatprep.subr.bf16.mxu0 %v1074_v0 }
 0x15a   :  { %918 = vmatpush3.bf16.msra.mxu1 %v917_v14 }
 0x15b   :  { %919 = vmatprep.subr.bf16.mxu1 %v1074_v0 }
 0x15c   :  { %891 = vmatpush3.bf16.msra.mxu0 %v1207_v25  ;;  %v439_v25 = vld [vmem:[#allocation9 + $0x60] sm:$0xff] }
 0x15d   :  { %892 = vmatprep.subr.bf16.mxu0 %v1074_v0  ;;  %v923_v27 = vpack.c.bf16 %v440_v26, %v439_v25 }
 0x15e   :  { %921 = vmatpush3.bf16.msra.mxu1 %v920_v24 }
 0x15f   :  { %922 = vmatprep.subr.bf16.mxu1 %v1074_v0 }
 0x160   :  { %894 = vmatpush3.bf16.msra.mxu0 %v1212_v31  ;;  %v187_v31 = vadd.f32 %v1251_v52, %v186_v20 }
 0x161   :  { %895 = vmatprep.subr.bf16.mxu0 %v1074_v0 }
 0x162   :  { %924 = vmatpush3.bf16.msra.mxu1 %v923_v27 }
 0x163   :  { %925 = vmatprep.subr.bf16.mxu1 %v1074_v0 }
 0x164   :  { %897 = vmatpush3.bf16.msra.mxu0 %v1217_v37 }
 0x165   :  { %898 = vmatprep.subr.bf16.mxu0 %v1074_v0 }
 0x166   :  { %927 = vmatpush3.bf16.msra.mxu1 %v926_v30 }
 0x168   :  { %900 = vmatpush3.bf16.msra.mxu0 %v851_v43 }
 0x169   :  { %901 = vmatprep.subr.bf16.mxu0 %v1074_v0 }
 0x16c   :  { %903 = vmatpush3.bf16.msra.mxu0 %v854_v49 }
 0x222   :  { %v345_v16 = vpop.f32.mrb[2].mxu0 }
 0x223   :  { %v349_v17 = vadd.f32 %v345_v16, %v182_v15  ;;  %v737_v18 = vpop.f32.mrb[3].mxu0 }
 0x225   :  { %946 = vtanh.f32 %v349_v17 }
 0x22f   :  { %v947_v19 = vpop.eup %946 }
 0x230   :  { %771 = vmatmul.mubr.f32.vlgmr.msra.gmra.mrb[4].mxu0 %v947_v19 }
 0x303   :  { %v417_v32 = vpop.f32.mrb[4].mxu0 }
 0x304   :  { %v421_v33 = vadd.f32 %v417_v32, %v187_v31  ;;  %v772_v34 = vpop.f32.mrb[5].mxu0 }
 0x306   :  { %948 = vtanh.f32 %v421_v33 }
 0x310   :  { %v949_v35 = vpop.eup %948 }
 0x311   :  { %806 = vmatmul.mubr.f32.vlgmr.msra.gmra.mrb[6].mxu1 %v949_v35 }
 0x3e4   :  { %v516_v37 = vpop.f32.mrb[6].mxu1 }
 0x3e5   :  { %v517_v38 = vadd.f32 %v539_v36, %v516_v37  ;;  %v807_v39 = vpop.f32.mrb[7].mxu1 }
 0x3e7   :  { %520 = vst [vmem:[#allocation11] sm:$0xff] %v517_v38 }
 0x3e8   :  { %1049 = shalt.err (!%p1046_p8)
}
 0x3e9   :  { %s1050_s27 = scalar_lea.hbm %s1301_s6, 128 }
 0x3ea   :  { %p1051_p9 = scmp.ne.s32.totalorder %s1301_s6, %s1050_s27  ;;  %p1054_p10 = scmp.lt.u32.totalorder %s1050_s27, %s1301_s6 }
 0x3ec   :  { %p1056_p11 = pnand %p1054_p10, %p1051_p9 }
 0x3ee   :  { %1059 = shalt.err (!%p1056_p11)
}
 0x3ef   :  { %530 = dma.vmem_to_hbm [thread:$0]  %s528_s22, 128, %s1301_s6, [#allocation5]  }
 0x3f0   :  { %1066 = dma.done.wait [#allocation5], 128  }
 0x3f1   :  { %1067 = vsyncadd [#allocation5], 4294967168 }
 0x3f2   :  { %534 = vsyncpa [#allocation4], 1 }
 0x3f3   :  { %535 = vsyncpa [#allocation7], 1 }
 0x3f4   :  { %536 = vsyncpa [#allocation10], 1 }
 0x3f5   :  { %537 = vsyncpa [#allocation5], 1 }

</bundles_post_ra>
